<compile_context>
chip_gen: v5e
topology: v5e:2x2
jax: 0.10.0
libtpu: 0.0.40
codegen_flags: <defaults>
</compile_context>

<pallas_src>
import jax
import jax.numpy as jnp
from jax.experimental import pallas as pl
from jax.experimental.pallas import tpu as pltpu

EPS = 1e-6            # default eps of torch.nn.functional.pairwise_distance
SUBLANE_BF16 = 16     # bf16 sublane-packing multiple
SUBLANE_F32 = 8       # f32 sublane multiple


def _round_up(x, m):
    return ((x + m - 1) // m) * m


# ---------------------------------------------------------------------------
# Fused kernel: backbone + prototypes + euclidean distances (one invocation)
# ---------------------------------------------------------------------------
def fused_proto_kernel(x_ref, w_ref, b_ref, y_ref, o_ref):
    """x:(M,Din) bf16, W:(Din,F) bf16, b:(1,F) f32, y:(1,M) i32 -> d:(M,N) f32."""
    mpad = x_ref.shape[0]
    npad = o_ref.shape[1]

    # Backbone: ReLU(x @ W + b).  bf16 MXU operands, f32 accumulation; the
    # bias add + ReLU stay in f32 on the VPU (v5e has no bf16 VPU).
    feats = jnp.maximum(
        jnp.dot(x_ref[...], w_ref[...], preferred_element_type=jnp.float32)
        + b_ref[...],
        0.0)                                                     # (M, F) f32

    # Class prototypes: one-hot sum matmul + per-class count normalization.
    # y holds the class id for support rows and -1 for query / padding rows,
    # so those columns never contribute to any prototype.
    class_ids = jax.lax.broadcasted_iota(jnp.int32, (npad, mpad), 0)
    onehot = (class_ids == y_ref[...]).astype(jnp.float32)       # (N, M)
    counts = jnp.sum(onehot, axis=1, keepdims=True)              # (N, 1)
    # Empty-class guard: torch would divide by zero (NaN); we emit a zero
    # prototype instead (documented behavioral difference).
    safe_counts = jnp.maximum(counts, 1.0)
    protos = (jnp.dot(onehot, feats, preferred_element_type=jnp.float32)
              / safe_counts)                                     # (N, F) f32

    # Euclidean distance with torch.pairwise_distance semantics:
    #   d_ij = || f_i - p_j + eps ||_2
    # Direct broadcast form: no gram-trick cancellation, keeps the eps floor.
    diff = feats[:, None, :] - protos[None, :, :] + EPS          # (M, N, F)
    o_ref[...] = jnp.sqrt(jnp.sum(diff * diff, axis=-1))         # (M, N)


def fused_prototypical_call(x_all, w_bf16, b_f32, y_cols, npad):
    mpad = x_all.shape[0]
    return pl.pallas_call(
        fused_proto_kernel,
        out_shape=jax.ShapeDtypeStruct((mpad, npad), jnp.float32),
        in_specs=[pl.BlockSpec(memory_space=pltpu.MemorySpace.VMEM)] * 4,
        out_specs=pl.BlockSpec(memory_space=pltpu.MemorySpace.VMEM),
    )(x_all, w_bf16, b_f32, y_cols)


# ---------------------------------------------------------------------------
# End-to-end forward (same output as PrototypicalNetwork.forward on the query)
# ---------------------------------------------------------------------------
def prototypical_forward(query_x, support_x, support_y, n_way, w, b):
    B = query_x.shape[0]
    S = support_x.shape[0]
    Din, F = w.shape

    # Stack query rows first, then support rows, directly in bf16, padded to a
    # bf16 sublane multiple so one MXU pass computes every feature vector.
    q2d = query_x.reshape(B, -1).astype(jnp.bfloat16)
    s2d = support_x.reshape(S, -1).astype(jnp.bfloat16)
    M = B + S
    mpad = _round_up(max(M, SUBLANE_BF16), SUBLANE_BF16)
    x_all = (jnp.zeros((mpad, Din), jnp.bfloat16)
             .at[:B].set(q2d).at[B:M].set(s2d))

    # Padded class-id row: support rows carry their class, everything else -1.
    y_cols = (jnp.full((1, mpad), -1, jnp.int32)
              .at[0, B:M].set(support_y.astype(jnp.int32)))

    npad = _round_up(max(n_way, SUBLANE_F32), SUBLANE_F32)

    # TODO(synk): for very large Din / F the fused kernel should tile the
    # backbone matmul over a (M, Din) grid; at few-shot sizes the whole
    # working set (< 1 MiB here) fits VMEM on every TPU generation.
    dists = fused_prototypical_call(
        x_all,
        w.astype(jnp.bfloat16),
        b.reshape(1, F).astype(jnp.float32),
        y_cols,
        npad)                                                    # (mpad, npad)

    # First B rows are the query rows; padded prototype columns sliced away.
    return dists[:B, :n_way]
    # TODO(synk): use_softmax=True branch (softmax over dim=0) not implemented;
    # the module default use_softmax=False returns raw distances.


# ---------------------------------------------------------------------------
# Main
# ---------------------------------------------------------------------------
if __name__ == "__main__":
    key = jax.random.PRNGKey(0)
    k_w, k_b, k_sup, k_q = jax.random.split(key, 4)

    # small shapes (NCHW, like the torch module)
    B, C, H, W = 2, 4, 16, 16
    Din = C * H * W                      # 1024
    F = 128                              # backbone feature width
    n_way, k_shot = 4, 2
    S = n_way * k_shot

    # deterministic synthetic backbone parameters (Flatten -> Linear -> ReLU)
    w_param = (jax.random.normal(k_w, (Din, F), jnp.float32)
               * (1.0 / jnp.sqrt(Din)))
    b_param = jax.random.normal(k_b, (1, F), jnp.float32) * 0.01

    support_x = jax.random.normal(k_sup, (S, C, H, W), jnp.float32)
    support_y = jnp.repeat(jnp.arange(n_way), k_shot)            # (8,)
    query_x = jax.random.normal(k_q, (B, C, H, W), jnp.float32)

    dists = prototypical_forward(query_x, support_x, support_y, n_way,
                                 w_param, b_param)
    dists = jax.block_until_ready(dists)
    assert dists.shape == (B, n_way)

    # ---- pure-JAX reference (same bf16 MXU operands, direct torch algebra) --
    w_bf = w_param.astype(jnp.bfloat16)
    q_feats_ref = jnp.maximum(
        jnp.dot(query_x.reshape(B, -1).astype(jnp.bfloat16), w_bf,
                preferred_element_type=jnp.float32) + b_param, 0.0)
    s_feats_ref = jnp.maximum(
        jnp.dot(support_x.reshape(S, -1).astype(jnp.bfloat16), w_bf,
                preferred_element_type=jnp.float32) + b_param, 0.0)
    protos_ref = []
    for y in range(n_way):
        m = (support_y == y).astype(jnp.float32)[:, None]
        protos_ref.append(jnp.sum(s_feats_ref * m, axis=0) / jnp.sum(m))
    protos_ref = jnp.stack(protos_ref, axis=0)                   # (n_way, F)
    diff_ref = q_feats_ref[:, None, :] - protos_ref[None, :, :] + EPS
    dists_ref = jnp.sqrt(jnp.sum(diff_ref * diff_ref, axis=-1))  # (B, n_way)

    max_err = jnp.max(jnp.abs(dists - dists_ref))
    assert jnp.allclose(dists, dists_ref, rtol=2e-3, atol=2e-3), (
        f"mismatch vs reference, max abs err = {max_err}")

    print("KERNEL_OK")
</pallas_src>

<mosaic_0001>
module attributes {stable_mosaic.version = 11 : i64} {
  func.func @fused_proto_kernel(%arg0: memref<16x1024xbf16, #tpu.memory_space<vmem>>, %arg1: memref<1024x128xbf16, #tpu.memory_space<vmem>>, %arg2: memref<1x128xf32, #tpu.memory_space<vmem>>, %arg3: memref<1x16xi32, #tpu.memory_space<vmem>>, %arg4: memref<16x8xf32, #tpu.memory_space<vmem>>) attributes {dimension_semantics = [], scalar_prefetch = 0 : i64, scratch_operands = 0 : i64, tpu.core_type = #tpu.core_type<tc>} {
    %c0 = arith.constant 0 : index
    %c0_0 = arith.constant 0 : index
    %0 = vector.load %arg0[%c0, %c0_0] : memref<16x1024xbf16, #tpu.memory_space<vmem>>, vector<16x1024xbf16>
    %c0_1 = arith.constant 0 : index
    %c0_2 = arith.constant 0 : index
    %1 = vector.load %arg1[%c0_1, %c0_2] : memref<1024x128xbf16, #tpu.memory_space<vmem>>, vector<1024x128xbf16>
    %cst = arith.constant dense<0.000000e+00> : vector<16x128xf32>
    %2 = tpu.matmul %0, %1, %cst {dimension_numbers = #tpu.dot_dimension_numbers<[1], [0], [0], [1], [0, 0, 1, 1], [], []>} : vector<16x1024xbf16>, vector<1024x128xbf16>, vector<16x128xf32> -> vector<16x128xf32>
    %c0_3 = arith.constant 0 : index
    %c0_4 = arith.constant 0 : index
    %3 = vector.load %arg2[%c0_3, %c0_4] : memref<1x128xf32, #tpu.memory_space<vmem>>, vector<1x128xf32>
    %4 = vector.broadcast %3 : vector<1x128xf32> to vector<16x128xf32>
    %5 = arith.addf %2, %4 : vector<16x128xf32>
    %cst_5 = arith.constant 0.000000e+00 : f32
    %6 = vector.broadcast %cst_5 : f32 to vector<16x128xf32>
    %7 = arith.maximumf %5, %6 : vector<16x128xf32>
    %8 = tpu.iota {dimensions = array<i32: 0>} : vector<8x16xi32>
    %c0_6 = arith.constant 0 : index
    %c0_7 = arith.constant 0 : index
    %9 = vector.load %arg3[%c0_6, %c0_7] : memref<1x16xi32, #tpu.memory_space<vmem>>, vector<1x16xi32>
    %10 = vector.broadcast %9 : vector<1x16xi32> to vector<8x16xi32>
    %11 = arith.cmpi eq, %8, %10 : vector<8x16xi32>
    %12 = arith.extui %11 : vector<8x16xi1> to vector<8x16xi32>
    %13 = arith.sitofp %12 : vector<8x16xi32> to vector<8x16xf32>
    %cst_8 = arith.constant dense<0.000000e+00> : vector<8xf32>
    %14 = vector.multi_reduction <add>, %13, %cst_8 [1] : vector<8x16xf32> to vector<8xf32>
    %15 = vector.shape_cast %14 : vector<8xf32> to vector<8x1xf32>
    %cst_9 = arith.constant 1.000000e+00 : f32
    %16 = vector.broadcast %cst_9 : f32 to vector<8x1xf32>
    %17 = arith.maximumf %15, %16 : vector<8x1xf32>
    %cst_10 = arith.constant dense<0.000000e+00> : vector<8x128xf32>
    %18 = tpu.matmul %13, %7, %cst_10 {dimension_numbers = #tpu.dot_dimension_numbers<[1], [0], [0], [1], [0, 0, 1, 1], [], []>} : vector<8x16xf32>, vector<16x128xf32>, vector<8x128xf32> -> vector<8x128xf32>
    %19 = vector.broadcast %17 : vector<8x1xf32> to vector<8x128xf32>
    %20 = arith.divf %18, %19 : vector<8x128xf32>
    %21 = vector.shape_cast %7 : vector<16x128xf32> to vector<16x1x128xf32>
    %22 = vector.shape_cast %20 : vector<8x128xf32> to vector<1x8x128xf32>
    %23 = vector.broadcast %21 : vector<16x1x128xf32> to vector<16x8x128xf32>
    %24 = vector.broadcast %22 : vector<1x8x128xf32> to vector<16x8x128xf32>
    %25 = arith.subf %23, %24 : vector<16x8x128xf32>
    %cst_11 = arith.constant 9.99999997E-7 : f32
    %26 = vector.broadcast %cst_11 : f32 to vector<16x8x128xf32>
    %27 = arith.addf %25, %26 : vector<16x8x128xf32>
    %28 = arith.mulf %27, %27 : vector<16x8x128xf32>
    %cst_12 = arith.constant dense<0.000000e+00> : vector<16x8xf32>
    %29 = vector.multi_reduction <add>, %28, %cst_12 [2] : vector<16x8x128xf32> to vector<16x8xf32>
    %30 = math.sqrt %29 : vector<16x8xf32>
    %c0_13 = arith.constant 0 : index
    %c0_14 = arith.constant 0 : index
    %31 = vector.load %arg4[%c0_13, %c0_14] : memref<16x8xf32, #tpu.memory_space<vmem>>, vector<16x8xf32>
    tpu.vector_store %arg4[%c0_13, %c0_14], %30 {strides = array<i32>} : memref<16x8xf32, #tpu.memory_space<vmem>>, vector<16x8xf32>,
    return
  }
}

</mosaic_0001>

<bundles_post_ra>
// kernel: tpu_custom_call.1
= control target key start
LH: loop header
LB: loop body
LE: loop exit
PB: predicated region body
PF: predicated region fallthrough
CT: control target
= control target key end

     0   :  { %9 = vsyncpa [#allocation3], 0  ;;  %s1982_s0 = inlined_call_operand.hbm [shape: bf16[16,1024], index: 0, kind: input, shape index: {}]   ;;  %s1983_s1 = inlined_call_operand.hbm [shape: bf16[1024,128], index: 1, kind: input, shape index: {}]   ;;  %s1984_s2 = inlined_call_operand.vmem [shape: f32[1,128], index: 2, kind: input, shape index: {}]   ;;  %s1985_s3 = inlined_call_operand.vmem [shape: s32[1,16], index: 3, kind: input, shape index: {}]   ;;  %s1986_s4 = inlined_call_operand.vmem [shape: f32[16,8], index: 4, kind: output, shape index: {}]  }
   0x1   :  { %s15_s17 = sshll.u32 %s1982_s0, 4  ;;  %s16_s17 = int_to_ptr.hbm [resolvable:$true] %s15_s17 }
   0x2   :  { %10 = vsyncpa [#allocation5], 0  ;;  %s1620_s18 = smov [#allocation2]   ;;  %s28_s22 = sshll.u32 %s1983_s1, 4  ;;  %s29_s22 = int_to_ptr.hbm [resolvable:$true] %s28_s22 }
   0x3   :  { %s17_s19 = sshll.u32 %s1620_s18, 4  ;;  %s1621_s23 = smov 512   ;;  %s18_s19 = int_to_ptr.vmem [resolvable:$true] %s17_s19 }
   0x4   :  { %s1622_s24 = smov 32   ;;  %s1623_s25 = smov [#allocation4]  }
   0x5   :  { %23 = dma.hbm_to_vmem [thread:$0]  %s16_s17, 1024, %s18_s19, [#allocation3], %s1621_s23, %s1621_s23, %s1622_s24  }
   0x6   :  { %s30_s26 = sshll.u32 %s1623_s25, 4  ;;  %s1624_s27 = smov 64   ;;  %s31_s26 = int_to_ptr.vmem [resolvable:$true] %s30_s26 }
   0x7   :  { %s1625_s28 = smov 4  }
   0x8   :  { %36 = dma.hbm_to_vmem [thread:$0]  %s29_s22, 8192, %s31_s26, [#allocation5], %s1624_s27, %s1624_s27, %s1625_s28  }
   0x9   :  { %1616 = dma.done.wait [#allocation3], 1024  }
   0xa   :  { %1617 = vsyncadd [#allocation3], 4294966272 }
   0xb   :  { %1618 = dma.done.wait [#allocation5], 8192  }
   0xc   :  { %1619 = vsyncadd [#allocation5], 4294959104  ;;  %v1468_v0 = vld [vmem:[#allocation4 + $0x38] sm:$0xff]  ;;  %v1467_v4 = vld [vmem:[#allocation4 + $0x30] sm:$0xff]  ;;  %vm734_vm1 = vcmask 130048  }
   0xd   :  { %v1476_v1 = vld [vmem:[#allocation4 + $0x78] sm:$0xff]  ;;  %613 = vmatpush.bf16.msra.mxu0 %v1468_v0  ;;  %v1475_v5 = vld [vmem:[#allocation4 + $0x70] sm:$0xff]  ;;  %v1466_v8 = vld [vmem:[#allocation4 + $0x28] sm:$0xff] }
   0xe   :  { %v1484_v2 = vld [vmem:[#allocation4 + $0xb8] sm:$0xff]  ;;  %627 = vmatpush.bf16.msra.mxu1 %v1476_v1  ;;  %v1483_v6 = vld [vmem:[#allocation4 + $0xb0] sm:$0xff]  ;;  %v1474_v9 = vld [vmem:[#allocation4 + $0x68] sm:$0xff] }
   0xf   :  { %v1492_v3 = vld [vmem:[#allocation4 + $0xf8] sm:$0xff]  ;;  %641 = vmatpush.bf16.msra.mxu2 %v1484_v2  ;;  %v1491_v7 = vld [vmem:[#allocation4 + $0xf0] sm:$0xff]  ;;  %v1482_v10 = vld [vmem:[#allocation4 + $0xa8] sm:$0xff] }
  0x10   :  { %655 = vmatpush.bf16.msra.mxu3 %v1492_v3  ;;  %v1490_v11 = vld [vmem:[#allocation4 + $0xe8] sm:$0xff]  ;;  %v1465_v12 = vld [vmem:[#allocation4 + $0x20] sm:$0xff]  ;;  %v1464_v16 = vld [vmem:[#allocation4 + $0x18] sm:$0xff] }
  0x11   :  { %614 = vmatpush.bf16.msra.mxu0 %v1467_v4  ;;  %v1473_v13 = vld [vmem:[#allocation4 + $0x60] sm:$0xff]  ;;  %v1472_v17 = vld [vmem:[#allocation4 + $0x58] sm:$0xff]  ;;  %v1463_v20 = vld [vmem:[#allocation4 + $0x10] sm:$0xff] }
  0x12   :  { %628 = vmatpush.bf16.msra.mxu1 %v1475_v5  ;;  %v1481_v14 = vld [vmem:[#allocation4 + $0xa0] sm:$0xff]  ;;  %v1480_v18 = vld [vmem:[#allocation4 + $0x98] sm:$0xff]  ;;  %v1471_v21 = vld [vmem:[#allocation4 + $0x50] sm:$0xff] }
  0x13   :  { %642 = vmatpush.bf16.msra.mxu2 %v1483_v6  ;;  %v1489_v15 = vld [vmem:[#allocation4 + $0xe0] sm:$0xff]  ;;  %v1488_v19 = vld [vmem:[#allocation4 + $0xd8] sm:$0xff]  ;;  %v1479_v22 = vld [vmem:[#allocation4 + $0x90] sm:$0xff] }
  0x14   :  { %656 = vmatpush.bf16.msra.mxu3 %v1491_v7  ;;  %v1487_v23 = vld [vmem:[#allocation4 + $0xd0] sm:$0xff]  ;;  %v1462_v24 = vld [vmem:[#allocation4 + $0x8] sm:$0xff]  ;;  %v1461_v28 = vld [vmem:[#allocation4] sm:$0xff] }
  0x15   :  { %615 = vmatpush.bf16.msra.mxu0 %v1466_v8  ;;  %v1470_v25 = vld [vmem:[#allocation4 + $0x48] sm:$0xff]  ;;  %v1469_v29 = vld [vmem:[#allocation4 + $0x40] sm:$0xff]  ;;  %v1500_v32 = vld [vmem:[#allocation4 + $0x138] sm:$0xff] }
  0x16   :  { %629 = vmatpush.bf16.msra.mxu1 %v1474_v9  ;;  %v1478_v26 = vld [vmem:[#allocation4 + $0x88] sm:$0xff]  ;;  %v1477_v30 = vld [vmem:[#allocation4 + $0x80] sm:$0xff]  ;;  %v1508_v33 = vld [vmem:[#allocation4 + $0x178] sm:$0xff] }
  0x17   :  { %643 = vmatpush.bf16.msra.mxu2 %v1482_v10  ;;  %v1486_v27 = vld [vmem:[#allocation4 + $0xc8] sm:$0xff]  ;;  %v1485_v31 = vld [vmem:[#allocation4 + $0xc0] sm:$0xff]  ;;  %v1516_v42 = vld [vmem:[#allocation4 + $0x1b8] sm:$0xff] }
  0x18   :  { %657 = vmatpush.bf16.msra.mxu3 %v1490_v11  ;;  %v1173_v34 = vld [vmem:[#allocation2 + $0x8] sm:$0xf]  ;;  %v1165_v36 = vld [vmem:[#allocation2] sm:$0xf]  ;;  %v1454_v38 = vld [vmem:[#allocation2 + $0xc] sm:$0xf] }
  0x19   :  { %616 = vmatpush.bf16.msra.mxu0 %v1465_v12  ;;  %v1458_v35 = vld [vmem:[#allocation2 + $0x24] sm:$0xf0]  ;;  %v1457_v37 = vld [vmem:[#allocation2 + $0x1c] sm:$0xf0]  ;;  %v1175_v39 = vld [vmem:[#allocation2 + $0x28] sm:$0xf0] }
  0x1a   :  { %630 = vmatpush.bf16.msra.mxu1 %v1473_v13  ;;  %v1453_v40 = vld [vmem:[#allocation2 + $0x4] sm:$0xf]  ;;  %v1524_v43 = vld [vmem:[#allocation4 + $0x1f8] sm:$0xff]  ;;  %v1174_v44 = vor.u32 %v1458_v35, %v1173_v34  ;;  %v1166_v45 = vor.u32 %v1457_v37, %v1165_v36  ;;  %v1178_v46 = vor.u32 %v1454_v38, %v1175_v39  ;;  %v1499_v48 = vld [vmem:[#allocation4 + $0x130] sm:$0xff] }
  0x1b   :  { %644 = vmatpush.bf16.msra.mxu2 %v1481_v14  ;;  %v1167_v41 = vld [vmem:[#allocation2 + $0x20] sm:$0xf0]  ;;  %v1507_v49 = vld [vmem:[#allocation4 + $0x170] sm:$0xff]  ;;  %v1498_v52 = vld [vmem:[#allocation4 + $0x128] sm:$0xff] }
  0x1c   :  { %658 = vmatpush.bf16.msra.mxu3 %v1489_v15  ;;  %v1170_v47 = vor.u32 %v1453_v40, %v1167_v41  ;;  %v1515_v50 = vld [vmem:[#allocation4 + $0x1b0] sm:$0xff]  ;;  %v1506_v53 = vld [vmem:[#allocation4 + $0x168] sm:$0xff]  ;;  %v1497_v56 = vld [vmem:[#allocation4 + $0x120] sm:$0xff] }
  0x1d   :  { %617 = vmatpush.bf16.msra.mxu0 %v1464_v16  ;;  %v1523_v51 = vld [vmem:[#allocation4 + $0x1f0] sm:$0xff]  ;;  %v1514_v54 = vld [vmem:[#allocation4 + $0x1a8] sm:$0xff]  ;;  %v1505_v57 = vld [vmem:[#allocation4 + $0x160] sm:$0xff] }
  0x1e   :  { %631 = vmatpush.bf16.msra.mxu1 %v1472_v17  ;;  %v1522_v55 = vld [vmem:[#allocation4 + $0x1e8] sm:$0xff]  ;;  %v1513_v58 = vld [vmem:[#allocation4 + $0x1a0] sm:$0xff]  ;;  %v1496_v60 = vld [vmem:[#allocation4 + $0x118] sm:$0xff] }
  0x1f   :  { %645 = vmatpush.bf16.msra.mxu2 %v1480_v18  ;;  %v1521_v59 = vld [vmem:[#allocation4 + $0x1e0] sm:$0xff]  ;;  %v1504_v61 = vld [vmem:[#allocation4 + $0x158] sm:$0xff]  ;;  %v1495_v0 = vld [vmem:[#allocation4 + $0x110] sm:$0xff] }
  0x20   :  { %659 = vmatpush.bf16.msra.mxu3 %v1488_v19  ;;  %v1512_v62 = vld [vmem:[#allocation4 + $0x198] sm:$0xff]  ;;  %v1503_v1 = vld [vmem:[#allocation4 + $0x150] sm:$0xff]  ;;  %v1494_v4 = vld [vmem:[#allocation4 + $0x108] sm:$0xff] }
  0x21   :  { %618 = vmatpush.bf16.msra.mxu0 %v1463_v20  ;;  %v1520_v63 = vld [vmem:[#allocation4 + $0x1d8] sm:$0xff]  ;;  %v1511_v2 = vld [vmem:[#allocation4 + $0x190] sm:$0xff]  ;;  %v1502_v5 = vld [vmem:[#allocation4 + $0x148] sm:$0xff] }
  0x22   :  { %632 = vmatpush.bf16.msra.mxu1 %v1471_v21  ;;  %v1519_v3 = vld [vmem:[#allocation4 + $0x1d0] sm:$0xff]  ;;  %v1510_v6 = vld [vmem:[#allocation4 + $0x188] sm:$0xff]  ;;  %v1493_v8 = vld [vmem:[#allocation4 + $0x100] sm:$0xff] }
  0x23   :  { %646 = vmatpush.bf16.msra.mxu2 %v1479_v22  ;;  %v1518_v7 = vld [vmem:[#allocation4 + $0x1c8] sm:$0xff]  ;;  %v1501_v9 = vld [vmem:[#allocation4 + $0x140] sm:$0xff]  ;;  %v1181_v12 = vld [vmem:[#allocation2 + $0x10] sm:$0xf] }
  0x24   :  { %660 = vmatpush.bf16.msra.mxu3 %v1487_v23  ;;  %v1509_v10 = vld [vmem:[#allocation4 + $0x180] sm:$0xff]  ;;  %v1459_v13 = vld [vmem:[#allocation2 + $0x2c] sm:$0xf0]  ;;  %v1455_v14 = vld [vmem:[#allocation2 + $0x14] sm:$0xf] }
  0x25   :  { %619 = vmatpush.bf16.msra.mxu0 %v1462_v24  ;;  %v1517_v11 = vld [vmem:[#allocation4 + $0x1c0] sm:$0xff]  ;;  %v1183_v15 = vld [vmem:[#allocation2 + $0x30] sm:$0xf0]  ;;  %v1189_v16 = vld [vmem:[#allocation2 + $0x18] sm:$0xf]  ;;  %v1182_v20 = vor.u32 %v1459_v13, %v1181_v12  ;;  %v727_v24 = vlaneseq }
  0x26   :  { %633 = vmatpush.bf16.msra.mxu1 %v1470_v25  ;;  %v1460_v17 = vld [vmem:[#allocation2 + $0x34] sm:$0xf0]  ;;  %v1456_v18 = vld [vmem:[#allocation2 + $0x1c] sm:$0xf]  ;;  %v1186_v21 = vor.u32 %v1455_v14, %v1183_v15  ;;  %v1532_v34 = vld [vmem:[%s1984_s2] ss:$0 sm:$0xff] }
  0x27   :  { %647 = vmatpush.bf16.msra.mxu2 %v1478_v26  ;;  %v1191_v19 = vld [vmem:[#allocation2 + $0x38] sm:$0xf0]  ;;  %v1190_v22 = vor.u32 %v1460_v17, %v1189_v16  ;;  %v728_v25 = vshrl.u32 %v727_v24, 7  ;;  %v1533_v26 = vld [vmem:[%s1985_s3] ss:$0 sm:$0xff] }
  0x28   :  { %661 = vmatpush.bf16.msra.mxu3 %v1486_v27  ;;  %v1194_v23 = vor.u32 %v1456_v18, %v1191_v19  ;;  %v1626_v27 = vmov 0.0  }
  0x29   :  { %620 = vmatpush.bf16.msra.mxu0 %v1461_v28  ;;  %vm731_vm0 = vcmp.eq.s32.totalorder %v728_v25, %v1533_v26 }
  0x2a   :  { %634 = vmatpush.bf16.msra.mxu1 %v1469_v29  ;;  %v1451_v28 = vsel %vm731_vm0, 1.0, %v1626_v27  ;;  %vm1131_vm0 = vcmask 1041409  }
  0x2b   :  { %648 = vmatpush.bf16.msra.mxu2 %v1477_v30  ;;  %v735_v29 = vsel %vm734_vm1, %v1451_v28, 0.0 }
  0x2c   :  { %662 = vmatpush.bf16.msra.mxu3 %v1485_v31  ;;  %621 = vmatmul.bf16.vlgmr.msra.gmra.mxu0 %v1166_v45 }
  0x2d   :  { %669 = vmatpush.bf16.msrb.mxu0 %v1500_v32  ;;  %635 = vmatmul.bf16.vlgmr.msra.gmra.mxu1 %v1170_v47 }
  0x2e   :  { %683 = vmatpush.bf16.msrb.mxu1 %v1508_v33  ;;  %649 = vmatmul.bf16.vlgmr.msra.gmra.mxu2 %v1174_v44 }
  0x2f   :  { %697 = vmatpush.bf16.msrb.mxu2 %v1516_v42  ;;  %663 = vmatmul.bf16.vlgmr.msra.gmra.mxu3 %v1178_v46 }
  0x30   :  { %711 = vmatpush.bf16.msrb.mxu3 %v1524_v43  ;;  %736 = vadd.xlane.f32.xlu0 %v735_v29 }
  0x31   :  { %670 = vmatpush.bf16.msrb.mxu0 %v1499_v48 }
  0x32   :  { %684 = vmatpush.bf16.msrb.mxu1 %v1507_v49 }
  0x33   :  { %698 = vmatpush.bf16.msrb.mxu2 %v1515_v50 }
  0x34   :  { %712 = vmatpush.bf16.msrb.mxu3 %v1523_v51 }
  0x35   :  { %671 = vmatpush.bf16.msrb.mxu0 %v1498_v52 }
  0x36   :  { %685 = vmatpush.bf16.msrb.mxu1 %v1506_v53 }
  0x37   :  { %699 = vmatpush.bf16.msrb.mxu2 %v1514_v54 }
  0x38   :  { %713 = vmatpush.bf16.msrb.mxu3 %v1522_v55 }
  0x39   :  { %672 = vmatpush.bf16.msrb.mxu0 %v1497_v56 }
  0x3a   :  { %686 = vmatpush.bf16.msrb.mxu1 %v1505_v57 }
  0x3b   :  { %700 = vmatpush.bf16.msrb.mxu2 %v1513_v58 }
  0x3c   :  { %714 = vmatpush.bf16.msrb.mxu3 %v1521_v59 }
  0x3d   :  { %673 = vmatpush.bf16.msrb.mxu0 %v1496_v60 }
  0x3e   :  { %687 = vmatpush.bf16.msrb.mxu1 %v1504_v61 }
  0x3f   :  { %701 = vmatpush.bf16.msrb.mxu2 %v1512_v62 }
  0x40   :  { %715 = vmatpush.bf16.msrb.mxu3 %v1520_v63 }
  0x41   :  { %674 = vmatpush.bf16.msrb.mxu0 %v1495_v0 }
  0x42   :  { %688 = vmatpush.bf16.msrb.mxu1 %v1503_v1 }
  0x43   :  { %702 = vmatpush.bf16.msrb.mxu2 %v1511_v2 }
  0x44   :  { %716 = vmatpush.bf16.msrb.mxu3 %v1519_v3 }
  0x45   :  { %675 = vmatpush.bf16.msrb.mxu0 %v1494_v4 }
  0x46   :  { %689 = vmatpush.bf16.msrb.mxu1 %v1502_v5 }
  0x47   :  { %703 = vmatpush.bf16.msrb.mxu2 %v1510_v6 }
  0x48   :  { %717 = vmatpush.bf16.msrb.mxu3 %v1518_v7 }
  0x49   :  { %676 = vmatpush.bf16.msrb.mxu0 %v1493_v8 }
  0x4a   :  { %690 = vmatpush.bf16.msrb.mxu1 %v1501_v9 }
  0x4b   :  { %704 = vmatpush.bf16.msrb.mxu2 %v1509_v10 }
  0x4c   :  { %718 = vmatpush.bf16.msrb.mxu3 %v1517_v11  ;;  %677 = vmatmul.bf16.vlgmr.msrb.gmra.mxu0 %v1182_v20 }
  0x4d   :  { %691 = vmatmul.bf16.vlgmr.msrb.gmra.mxu1 %v1186_v21 }
  0x4e   :  { %705 = vmatmul.bf16.vlgmr.msrb.gmra.mxu2 %v1190_v22 }
  0x4f   :  { %719 = vmatmul.bf16.vlgmr.msrb.gmra.mxu3 %v1194_v23 }
  0xa3   :  { %v737_v1 = vpop.xlane.xlu0 %736 }
  0xa4   :  { %v738_v2 = vmax.f32 %v737_v1, 1.0 }
  0xa6   :  { %1534 = vrcp.f32 %v738_v2  ;;  %vm767_vm2 = vweird.f32 %v738_v2  ;;  %v773_v7 = vand.u32 2147483648, %v738_v2  ;;  %v771_v9 = vand.u32 2147483647, %v738_v2 }
  0xa8   :  { %v774_v10 = vor.u32 1.1754944e-38, %v773_v7  ;;  %vm772_vm5 = vcmp.eq.f32.partialorder %v771_v9, 8.507059e+37 }
  0xa9   :  { %v622_v30 = vpop.f32.mrf.mxu0 }
  0xaa   :  { %v636_v31 = vpop.f32.mrf.mxu1  ;;  %v623_v36 = vadd.f32 %v1532_v34, %v622_v30 }
  0xac   :  { %v637_v39 = vadd.f32 %v636_v31, %v623_v36  ;;  %v1535_v3 = vpop.eup %1534 }
  0xad   :  { %v763_v4 = vmul.f32 %v1535_v3, %v738_v2  ;;  %vm768_vm3 = vweird.f32 %v1535_v3 }
  0xae   :  { %vm769_vm4 = vmor %vm767_vm2, %vm768_vm3  ;;  %vm1133_vm2 = vcmask 1042434  }
  0xaf   :  { %v764_v5 = vsub.f32 1.0, %v763_v4 }
  0xb1   :  { %v650_v32 = vpop.f32.mrf.mxu2  ;;  %v624_v35 = vpop.f32.mrf.mxu0  ;;  %v765_v6 = vmul.f32 %v1535_v3, %v764_v5 }
  0xb2   :  { %v664_v33 = vpop.f32.mrf.mxu3  ;;  %v638_v37 = vpop.f32.mrf.mxu1  ;;  %v625_v38 = vadd.f32 %v1532_v34, %v624_v35  ;;  %v651_v44 = vadd.f32 %v650_v32, %v637_v39 }
  0xb3   :  { %v766_v8 = vadd.f32 %v1535_v3, %v765_v6 }
  0xb4   :  { %v639_v42 = vadd.f32 %v638_v37, %v625_v38  ;;  %v665_v47 = vadd.f32 %v664_v33, %v651_v44 }
  0xb5   :  { %v770_v11 = vsel %vm769_vm4, %v1535_v3, %v766_v8 }
  0xb6   :  { %v775_v15 = vsel %vm772_vm5, %v774_v10, %v770_v11 }
  0xb9   :  { %v652_v40 = vpop.f32.mrf.mxu2 }
  0xba   :  { %v666_v41 = vpop.f32.mrf.mxu3  ;;  %v653_v46 = vadd.f32 %v652_v40, %v639_v42 }
  0xbc   :  { %v667_v50 = vadd.f32 %v666_v41, %v653_v46 }
  0xc9   :  { %v678_v43 = vpop.f32.mrf.mxu0 }
  0xca   :  { %v692_v45 = vpop.f32.mrf.mxu1  ;;  %v679_v51 = vadd.f32 %v678_v43, %v665_v47 }
  0xcc   :  { %v693_v54 = vadd.f32 %v692_v45, %v679_v51 }
  0xd1   :  { %v706_v48 = vpop.f32.mrf.mxu2  ;;  %v680_v52 = vpop.f32.mrf.mxu0 }
  0xd2   :  { %v720_v49 = vpop.f32.mrf.mxu3  ;;  %v681_v53 = vadd.f32 %v680_v52, %v667_v50  ;;  %v694_v55 = vpop.f32.mrf.mxu1  ;;  %v707_v56 = vadd.f32 %v706_v48, %v693_v54 }
  0xd4   :  { %v695_v57 = vadd.f32 %v694_v55, %v681_v53  ;;  %v721_v61 = vadd.f32 %v720_v49, %v707_v56 }
  0xd6   :  { %v1668_v0 = vmax.f32 %v721_v61, 0.0 }
  0xd8   :  { %v779_v13 = vrot.slane %v1668_v0, 1  ;;  %v780_v16 = vrot.slane %v1668_v0, 2  ;;  %v793_v20 = vperm.slane %v1668_v0, 0  ;;  %v781_v39 = vrot.slane %v1668_v0, 3 }
  0xd9   :  { %v708_v58 = vpop.f32.mrf.mxu2  ;;  %v782_v40 = vrot.slane %v1668_v0, 4  ;;  %v783_v53 = vrot.slane %v1668_v0, 5  ;;  %v784_v7 = vrot.slane %v1668_v0, 6  ;;  %v785_v8 = vrot.slane %v1668_v0, 7 }
  0xda   :  { %v709_v59 = vadd.f32 %v708_v58, %v695_v57  ;;  %v722_v60 = vpop.f32.mrf.mxu3  ;;  %v794_v19 = vperm.slane %v779_v13, 0  ;;  %v795_v26 = vperm.slane %v780_v16, 0  ;;  %v796_v45 = vperm.slane %v781_v39, 0 }
  0xdb   :  { %v797_v46 = vperm.slane %v782_v40, 0  ;;  %v799_v13 = vperm.slane %v784_v7, 0 }
  0xdc   :  { %v723_v62 = vadd.f32 %v722_v60, %v709_v59  ;;  %v798_v59 = vperm.slane %v783_v53, 0 }
  0xde   :  { %v1666_v63 = vmax.f32 %v723_v62, 0.0 }
  0xe0   :  { %756 = vmatpush.msra.mxu0 %v1666_v63  ;;  %v786_v12 = vrot.slane %v1666_v63, 1  ;;  %v787_v21 = vrot.slane %v1666_v63, 2  ;;  %v801_v27 = vperm.slane %v1666_v63, 0  ;;  %v788_v38 = vrot.slane %v1666_v63, 3 }
  0xe1   :  { %v789_v54 = vrot.slane %v1666_v63, 4  ;;  %v790_v55 = vrot.slane %v1666_v63, 5  ;;  %v791_v6 = vrot.slane %v1666_v63, 6 }
  0xe2   :  { %757 = vmatpush.msra.mxu0 %v1668_v0  ;;  %v802_v18 = vperm.slane %v786_v12, 0  ;;  %v803_v32 = vperm.slane %v787_v21, 0  ;;  %v804_v44 = vperm.slane %v788_v38, 0 }
  0xe3   :  { %1452 = vmatmul.msk.f32.vlgmr.msra.gmra.mxu0 %vm734_vm1, %v1451_v28  ;;  %v805_v60 = vperm.slane %v789_v54, 0  ;;  %v806_v61 = vperm.slane %v790_v55, 0  ;;  %v807_v12 = vperm.slane %v791_v6, 0 }
 0x160   :  { %v759_v14 = vpop.f32.mrf.mxu0 }
 0x161   :  { %v1676_v17 = vmul.f32 %v775_v15, %v759_v14  ;;  %v800_v14 = vperm.slane %v785_v8, 0 }
 0x163   :  { %v834_v22 = vsub.f32 %v802_v18, %v1676_v17  ;;  %v826_v23 = vsub.f32 %v794_v19, %v1676_v17  ;;  %v825_v25 = vsub.f32 %v793_v20, %v1676_v17  ;;  %v827_v31 = vsub.f32 %v795_v26, %v1676_v17 }
 0x164   :  { %v833_v36 = vsub.f32 %v801_v27, %v1676_v17  ;;  %v835_v37 = vsub.f32 %v803_v32, %v1676_v17  ;;  %v836_v49 = vsub.f32 %v804_v44, %v1676_v17  ;;  %v828_v50 = vsub.f32 %v796_v45, %v1676_v17 }
 0x165   :  { %v850_v28 = vadd.f32 1e-06, %v834_v22  ;;  %v842_v29 = vadd.f32 1e-06, %v826_v23  ;;  %v841_v30 = vadd.f32 1e-06, %v825_v25  ;;  %v829_v52 = vsub.f32 %v797_v46, %v1676_v17 }
 0x166   :  { %v843_v41 = vadd.f32 1e-06, %v827_v31  ;;  %v849_v42 = vadd.f32 1e-06, %v833_v36  ;;  %v851_v43 = vadd.f32 1e-06, %v835_v37  ;;  %v830_v2 = vsub.f32 %v798_v59, %v1676_v17 }
 0x167   :  { %v866_v33 = vmul.f32 %v850_v28, %v850_v28  ;;  %v858_v34 = vmul.f32 %v842_v29, %v842_v29  ;;  %v857_v35 = vmul.f32 %v841_v30, %v841_v30  ;;  %v852_v56 = vadd.f32 1e-06, %v836_v49 }
 0x168   :  { %v859_v47 = vmul.f32 %v843_v41, %v843_v41  ;;  %v865_v48 = vmul.f32 %v849_v42, %v849_v42  ;;  %v867_v51 = vmul.f32 %v851_v43, %v851_v43  ;;  %v844_v57 = vadd.f32 1e-06, %v828_v50 }
 0x169   :  { %891 = vadd.xlane.f32.xlu2 %v866_v33  ;;  %875 = vadd.xlane.f32.xlu1 %v858_v34  ;;  %v845_v58 = vadd.f32 1e-06, %v829_v52  ;;  %v868_v62 = vmul.f32 %v852_v56, %v852_v56  ;;  %v837_v3 = vsub.f32 %v805_v60, %v1676_v17  ;;  %v838_v5 = vsub.f32 %v806_v61, %v1676_v17 }
 0x16a   :  { %873 = vadd.xlane.f32.xlu0 %v857_v35  ;;  %v860_v1 = vmul.f32 %v844_v57, %v844_v57  ;;  %v846_v9 = vadd.f32 1e-06, %v830_v2  ;;  %v839_v18 = vsub.f32 %v807_v12, %v1676_v17  ;;  %v831_v19 = vsub.f32 %v799_v13, %v1676_v17 }
 0x16b   :  { %v861_v4 = vmul.f32 %v845_v58, %v845_v58  ;;  %v853_v10 = vadd.f32 1e-06, %v837_v3  ;;  %v854_v11 = vadd.f32 1e-06, %v838_v5  ;;  %v832_v21 = vsub.f32 %v800_v14, %v1676_v17 }
 0x16c   :  { %v862_v15 = vmul.f32 %v846_v9, %v846_v9  ;;  %v792_v22 = vrot.slane %v1666_v63, 7  ;;  %v855_v0 = vadd.f32 1e-06, %v839_v18  ;;  %v847_v23 = vadd.f32 1e-06, %v831_v19 }
 0x16d   :  { %v869_v16 = vmul.f32 %v853_v10, %v853_v10  ;;  %v870_v20 = vmul.f32 %v854_v11, %v854_v11  ;;  %v848_v25 = vadd.f32 1e-06, %v832_v21  ;;  %v1742_v5 = vand.u32 127, %v727_v24 }
 0x16e   :  { %v808_v26 = vperm.slane %v792_v22, 0  ;;  %v871_v27 = vmul.f32 %v855_v0, %v855_v0  ;;  %v863_v28 = vmul.f32 %v847_v23, %v847_v23 }
 0x16f   :  { %v864_v30 = vmul.f32 %v848_v25, %v848_v25 }
 0x170   :  { %v840_v29 = vsub.f32 %v808_v26, %v1676_v17 }
 0x171   :  { %877 = vadd.xlane.f32.xlu2 %v859_v47  ;;  %889 = vadd.xlane.f32.xlu1 %v865_v48 }
 0x172   :  { %893 = vadd.xlane.f32.xlu0 %v867_v51  ;;  %v856_v31 = vadd.f32 1e-06, %v840_v29 }
 0x174   :  { %v872_v32 = vmul.f32 %v856_v31, %v856_v31 }
 0x179   :  { %895 = vadd.xlane.f32.xlu2 %v868_v62  ;;  %879 = vadd.xlane.f32.xlu1 %v860_v1 }
 0x17a   :  { %881 = vadd.xlane.f32.xlu0 %v861_v4 }
 0x181   :  { %883 = vadd.xlane.f32.xlu2 %v862_v15  ;;  %897 = vadd.xlane.f32.xlu1 %v869_v16 }
 0x182   :  { %899 = vadd.xlane.f32.xlu0 %v870_v20 }
 0x189   :  { %901 = vadd.xlane.f32.xlu2 %v871_v27  ;;  %885 = vadd.xlane.f32.xlu1 %v863_v28 }
 0x18a   :  { %887 = vadd.xlane.f32.xlu0 %v864_v30 }
 0x191   :  { %903 = vadd.xlane.f32.xlu1 %v872_v32 }
 0x1dc   :  { %v1707_v33 = vpop.xlane.xlu2 %891  ;;  %v1709_v34 = vpop.xlane.xlu1 %875 }
 0x1dd   :  { %1536 = vrsqrt.f32 %v1707_v33  ;;  %v1712_v63 = vpop.xlane.xlu0 %873  ;;  %vm1020_vm6 = vcmp.eq.f32.partialorder %v1707_v33, inf  ;;  %vm1022_vm7 = vcmp.eq.f32.partialorder %v1707_v33, 0.0  ;;  %v1023_v24 = vand.u32 2147483648, %v1707_v33 }
 0x1de   :  { %1538 = vrsqrt.f32 %v1709_v34  ;;  %vm924_vm8 = vcmp.eq.f32.partialorder %v1709_v34, inf  ;;  %vm926_vm9 = vcmp.eq.f32.partialorder %v1709_v34, 0.0  ;;  %v927_v20 = vand.u32 2147483648, %v1709_v34 }
 0x1df   :  { %1540 = vrsqrt.f32 %v1712_v63  ;;  %vm912_vm10 = vcmp.eq.f32.partialorder %v1712_v63, inf  ;;  %vm914_vm11 = vcmp.eq.f32.partialorder %v1712_v63, 0.0  ;;  %v915_v25 = vand.u32 2147483648, %v1712_v63 }
 0x1e3   :  { %v1537_v17 = vpop.eup %1536 }
 0x1e4   :  { %v1539_v35 = vpop.eup %1538  ;;  %v1014_v36 = vmul.f32 %v1537_v17, %v1707_v33  ;;  %v1717_v37 = vpop.xlane.xlu2 %877 }
 0x1e5   :  { %v1719_v38 = vpop.xlane.xlu1 %889  ;;  %v1541_v39 = vpop.eup %1540  ;;  %v918_v40 = vmul.f32 %v1539_v35, %v1709_v34  ;;  %1542 = vrsqrt.f32 %v1717_v37  ;;  %vm936_vm12 = vcmp.eq.f32.partialorder %v1717_v37, inf  ;;  %vm938_vm13 = vcmp.eq.f32.partialorder %v1717_v37, 0.0 }
 0x1e6   :  { %v1723_v41 = vpop.xlane.xlu0 %893  ;;  %v906_v42 = vmul.f32 %v1541_v39, %v1712_v63  ;;  %1544 = vrsqrt.f32 %v1719_v38  ;;  %v1015_v43 = vmul.f32 %v1537_v17, %v1014_v36  ;;  %v939_v29 = vand.u32 2147483648, %v1717_v37 }
 0x1e7   :  { %1546 = vrsqrt.f32 %v1723_v41  ;;  %v919_v44 = vmul.f32 %v1539_v35, %v918_v40  ;;  %vm1008_vm14 = vcmp.eq.f32.partialorder %v1719_v38, inf  ;;  %vm1010_vm15 = vcmp.eq.f32.partialorder %v1719_v38, 0.0 }
 0x1e8   :  { %v907_v45 = vmul.f32 %v1541_v39, %v906_v42  ;;  %v1016_v48 = vmul.f32 0.5, %v1015_v43  ;;  %vm1032_vm1 = vcmp.eq.f32.partialorder %v1723_v41, inf  ;;  %vm1034_vm3 = vcmp.eq.f32.partialorder %v1723_v41, 0.0 }
 0x1e9   :  { %v920_v51 = vmul.f32 0.5, %v919_v44 }
 0x1ea   :  { %v908_v52 = vmul.f32 0.5, %v907_v45  ;;  %v1017_v59 = vsub.f32 1.5, %v1016_v48  ;;  %v1011_v45 = vand.u32 2147483648, %v1719_v38 }
 0x1eb   :  { %v1543_v46 = vpop.eup %1542  ;;  %v921_v60 = vsub.f32 1.5, %v920_v51 }
 0x1ec   :  { %v1545_v47 = vpop.eup %1544  ;;  %v930_v49 = vmul.f32 %v1543_v46, %v1717_v37  ;;  %v1729_v50 = vpop.xlane.xlu2 %895  ;;  %v909_v61 = vsub.f32 1.5, %v908_v52  ;;  %v1018_v6 = vmul.f32 %v1537_v17, %v1017_v59 }
 0x1ed   :  { %v1002_v53 = vmul.f32 %v1545_v47, %v1719_v38  ;;  %1548 = vrsqrt.f32 %v1729_v50  ;;  %v1733_v54 = vpop.xlane.xlu1 %879  ;;  %v1547_v55 = vpop.eup %1546  ;;  %v922_v8 = vmul.f32 %v1539_v35, %v921_v60  ;;  %vm1044_vm4 = vcmp.eq.f32.partialorder %v1729_v50, inf }
 0x1ee   :  { %v931_v56 = vmul.f32 %v1543_v46, %v930_v49  ;;  %v1026_v58 = vmul.f32 %v1547_v55, %v1723_v41  ;;  %1550 = vrsqrt.f32 %v1733_v54  ;;  %v1739_v4 = vpop.xlane.xlu0 %881  ;;  %v910_v9 = vmul.f32 %v1541_v39, %v909_v61 }
 0x1ef   :  { %v1003_v57 = vmul.f32 %v1545_v47, %v1002_v53  ;;  %1552 = vrsqrt.f32 %v1739_v4  ;;  %v1019_v19 = vmul.f32 %v1018_v6, %v1707_v33  ;;  %v923_v21 = vmul.f32 %v922_v8, %v1709_v34 }
 0x1f0   :  { %v932_v62 = vmul.f32 0.5, %v931_v56  ;;  %v1027_v2 = vmul.f32 %v1547_v55, %v1026_v58  ;;  %v911_v22 = vmul.f32 %v910_v9, %v1712_v63  ;;  %vm1046_vm5 = vcmp.eq.f32.partialorder %v1729_v50, 0.0 }
 0x1f1   :  { %v1004_v1 = vmul.f32 0.5, %v1003_v57  ;;  %v1021_v31 = vsel %vm1020_vm6, %v1707_v33, %v1019_v19  ;;  %v925_v17 = vsel %vm924_vm8, %v1709_v34, %v923_v21  ;;  %vm948_vm6 = vcmp.eq.f32.partialorder %v1733_v54, inf }
 0x1f2   :  { %v933_v10 = vsub.f32 1.5, %v932_v62  ;;  %v1028_v13 = vmul.f32 0.5, %v1027_v2  ;;  %v913_v35 = vsel %vm912_vm10, %v1712_v63, %v911_v22  ;;  %v1799_v48 = vsel %vm1022_vm7, %v1023_v24, %v1021_v31 }
 0x1f3   :  { %v1737_v3 = vpop.eup %1548  ;;  %v1005_v12 = vsub.f32 1.5, %v1004_v1  ;;  %v928_v49 = vsel %vm926_vm9, %v927_v20, %v925_v17  ;;  %v1124_v60 = vperm.slane %v1799_v48, %v1742_v5  ;;  %v1047_v62 = vand.u32 2147483648, %v1729_v50 }
 0x1f4   :  { %v1038_v7 = vmul.f32 %v1737_v3, %v1729_v50  ;;  %v1747_v11 = vpop.eup %1550  ;;  %v1751_v15 = vpop.xlane.xlu2 %883  ;;  %v934_v0 = vmul.f32 %v1543_v46, %v933_v10  ;;  %v1029_v27 = vsub.f32 1.5, %v1028_v13  ;;  %v1035_v46 = vand.u32 2147483648, %v1723_v41 }
 0x1f5   :  { %v942_v16 = vmul.f32 %v1747_v11, %v1733_v54  ;;  %v1759_v18 = vpop.xlane.xlu1 %897  ;;  %v1006_v26 = vmul.f32 %v1545_v47, %v1005_v12  ;;  %1554 = vrsqrt.f32 %v1751_v15  ;;  %v1773_v30 = vpop.eup %1552  ;;  %v1116_v61 = vperm.slane %v928_v49, %v1742_v5 }
 0x1f6   :  { %v1039_v14 = vmul.f32 %v1737_v3, %v1038_v7  ;;  %v935_v36 = vmul.f32 %v934_v0, %v1717_v37  ;;  %v954_v39 = vmul.f32 %v1773_v30, %v1739_v4  ;;  %v1789_v40 = vpop.xlane.xlu0 %899  ;;  %v1030_v43 = vmul.f32 %v1547_v55, %v1029_v27 }
 0x1f7   :  { %v943_v23 = vmul.f32 %v1747_v11, %v942_v16  ;;  %v1007_v42 = vmul.f32 %v1006_v26, %v1719_v38  ;;  %1556 = vrsqrt.f32 %v1759_v18  ;;  %v916_v55 = vsel %vm914_vm11, %v915_v25, %v913_v35 }
 0x1f8   :  { %v1040_v28 = vmul.f32 0.5, %v1039_v14  ;;  %v955_v47 = vmul.f32 %v1773_v30, %v954_v39  ;;  %1558 = vrsqrt.f32 %v1789_v40  ;;  %v937_v33 = vsel %vm936_vm12, %v1717_v37, %v935_v36 }
 0x1f9   :  { %v944_v32 = vmul.f32 0.5, %v943_v23  ;;  %v1009_v57 = vsel %vm1008_vm14, %v1719_v38, %v1007_v42  ;;  %v1031_v58 = vmul.f32 %v1030_v43, %v1723_v41  ;;  %v1115_v2 = vperm.slane %v916_v55, %v1742_v5 }
 0x1fa   :  { %v1041_v44 = vsub.f32 1.5, %v1040_v28  ;;  %v956_v34 = vmul.f32 0.5, %v955_v47  ;;  %v940_v6 = vsel %vm938_vm13, %v939_v29, %v937_v33  ;;  %v1012_v8 = vsel %vm1010_vm15, %v1011_v45, %v1009_v57 }
 0x1fb   :  { %v945_v51 = vsub.f32 1.5, %v944_v32  ;;  %v1555_v53 = vpop.eup %1554  ;;  %v1033_v37 = vsel %vm1032_vm1, %v1723_v41, %v1031_v58  ;;  %vm950_vm7 = vcmp.eq.f32.partialorder %v1733_v54, 0.0  ;;  %v1117_v38 = vperm.slane %v940_v6, %v1742_v5 }
 0x1fc   :  { %v1805_v52 = vpop.xlane.xlu2 %901  ;;  %v1042_v59 = vmul.f32 %v1737_v3, %v1041_v44  ;;  %v966_v63 = vmul.f32 %v1555_v53, %v1751_v15  ;;  %v957_v9 = vsub.f32 1.5, %v956_v34  ;;  %v951_v14 = vand.u32 2147483648, %v1733_v54 }
 0x1fd   :  { %v1813_v56 = vpop.xlane.xlu1 %885  ;;  %1560 = vrsqrt.f32 %v1805_v52  ;;  %v1557_v1 = vpop.eup %1556  ;;  %v946_v3 = vmul.f32 %v1747_v11, %v945_v51  ;;  %v1132_v20 = vsel %vm1131_vm0, %v1116_v61, %v1115_v2  ;;  %v1123_v21 = vperm.slane %v1012_v8, %v1742_v5 }
 0x1fe   :  { %v967_v7 = vmul.f32 %v1555_v53, %v966_v63  ;;  %v1050_v10 = vmul.f32 %v1557_v1, %v1759_v18  ;;  %v1835_v12 = vpop.eup %1558  ;;  %v1043_v13 = vmul.f32 %v1042_v59, %v1729_v50  ;;  %1562 = vrsqrt.f32 %v1813_v56  ;;  %v1847_v19 = vpop.xlane.xlu0 %887 }
 0x1ff   :  { %v1062_v16 = vmul.f32 %v1835_v12, %v1789_v40  ;;  %v947_v22 = vmul.f32 %v946_v3, %v1733_v54  ;;  %v1854_v25 = vsel %vm1034_vm3, %v1035_v46, %v1033_v37  ;;  %v958_v26 = vmul.f32 %v1773_v30, %v957_v9 }
 0x200   :  { %v968_v11 = vmul.f32 0.5, %v967_v7  ;;  %v1051_v24 = vmul.f32 %v1557_v1, %v1050_v10  ;;  %vm960_vm8 = vcmp.eq.f32.partialorder %v1739_v4, inf  ;;  %v1045_v29 = vsel %vm1044_vm4, %v1729_v50, %v1043_v13 }
 0x201   :  { %v1063_v28 = vmul.f32 %v1835_v12, %v1062_v16  ;;  %1564 = vrsqrt.f32 %v1847_v19  ;;  %v1134_v41 = vsel %vm1133_vm2, %v1117_v38, %v1132_v20  ;;  %vm1135_vm9 = vcmask 1043459  }
 0x202   :  { %v969_v0 = vsub.f32 1.5, %v968_v11  ;;  %v1052_v27 = vmul.f32 0.5, %v1051_v24  ;;  %v963_v17 = vand.u32 2147483648, %v1739_v4  ;;  %v1869_v42 = vsel %vm1131_vm0, %v1124_v60, %v1123_v21 }
 0x203   :  { %v1561_v23 = vpop.eup %1560  ;;  %v1064_v35 = vmul.f32 0.5, %v1063_v28  ;;  %v949_v43 = vsel %vm948_vm6, %v1733_v54, %v947_v22  ;;  %vm962_vm10 = vcmp.eq.f32.partialorder %v1739_v4, 0.0  ;;  %vm972_vm11 = vcmp.eq.f32.partialorder %v1751_v15, inf }
 0x204   :  { %v970_v31 = vmul.f32 %v1555_v53, %v969_v0  ;;  %v1074_v32 = vmul.f32 %v1561_v23, %v1805_v52  ;;  %v1053_v30 = vsub.f32 1.5, %v1052_v27  ;;  %v1563_v39 = vpop.eup %1562  ;;  %v1125_v45 = vperm.slane %v1854_v25, %v1742_v5 }
 0x205   :  { %v1866_v36 = vpop.xlane.xlu1 %903  ;;  %v1880_v46 = vsel %vm1046_vm5, %v1047_v62, %v1045_v29  ;;  %v959_v47 = vmul.f32 %v958_v26, %v1739_v4  ;;  %v978_v48 = vmul.f32 %v1563_v39, %v1813_v56  ;;  %v1065_v51 = vsub.f32 1.5, %v1064_v35 }
 0x206   :  { %v1075_v44 = vmul.f32 %v1561_v23, %v1074_v32  ;;  %v971_v49 = vmul.f32 %v970_v31, %v1751_v15  ;;  %1566 = vrsqrt.f32 %v1866_v36  ;;  %v952_v55 = vsel %vm950_vm7, %v951_v14, %v949_v43 }
 0x207   :  { %vm974_vm12 = vcmp.eq.f32.partialorder %v1751_v15, 0.0  ;;  %v1054_v33 = vmul.f32 %v1557_v1, %v1053_v30  ;;  %v979_v34 = vmul.f32 %v1563_v39, %v978_v48  ;;  %v1565_v50 = vpop.eup %1564  ;;  %v975_v57 = vand.u32 2147483648, %v1751_v15 }
 0x208   :  { %v1076_v53 = vmul.f32 0.5, %v1075_v44  ;;  %vm1056_vm13 = vcmp.eq.f32.partialorder %v1759_v18, inf  ;;  %v1059_v58 = vand.u32 2147483648, %v1759_v18  ;;  %v1126_v63 = vperm.slane %v1880_v46, %v1742_v5 }
 0x209   :  { %vm1137_vm14 = vcmask 1044484   ;;  %vm1058_vm15 = vcmp.eq.f32.partialorder %v1759_v18, 0.0  ;;  %vm1068_vm0 = vcmp.eq.f32.partialorder %v1789_v40, inf  ;;  %v980_v54 = vmul.f32 0.5, %v979_v34 }
 0x20a   :  { %v1077_v59 = vsub.f32 1.5, %v1076_v53  ;;  %v990_v60 = vmul.f32 %v1565_v50, %v1847_v19  ;;  %v1118_v61 = vperm.slane %v952_v55, %v1742_v5  ;;  %v961_v62 = vsel %vm960_vm8, %v1739_v4, %v959_v47 }
 0x20b   :  { %vm1139_vm1 = vcmask 1045509   ;;  %v973_v1 = vsel %vm972_vm11, %v1751_v15, %v971_v49  ;;  %v1066_v2 = vmul.f32 %v1835_v12, %v1065_v51  ;;  %v1055_v6 = vmul.f32 %v1054_v33, %v1759_v18 }
 0x20c   :  { %v1078_v3 = vmul.f32 %v1561_v23, %v1077_v59  ;;  %v981_v7 = vsub.f32 1.5, %v980_v54  ;;  %v991_v8 = vmul.f32 %v1565_v50, %v990_v60  ;;  %v1567_v9 = vpop.eup %1566  ;;  %vm1070_vm3 = vcmp.eq.f32.partialorder %v1789_v40, 0.0 }
 0x20d   :  { %v1071_v10 = vand.u32 2147483648, %v1789_v40  ;;  %vm1141_vm4 = vcmask 1046534   ;;  %vm1080_vm5 = vcmp.eq.f32.partialorder %v1805_v52, inf  ;;  %v1083_v37 = vand.u32 2147483648, %v1805_v52 }
 0x20e   :  { %v964_v13 = vsel %vm962_vm10, %v963_v17, %v961_v62  ;;  %vm1082_vm6 = vcmp.eq.f32.partialorder %v1805_v52, 0.0  ;;  %v982_v12 = vmul.f32 %v1563_v39, %v981_v7  ;;  %vm984_vm7 = vcmp.eq.f32.partialorder %v1813_v56, inf }
 0x20f   :  { %v992_v11 = vmul.f32 0.5, %v991_v8  ;;  %v1136_v38 = vsel %vm1135_vm9, %v1118_v61, %v1134_v41  ;;  %v976_v14 = vsel %vm974_vm12, %v975_v57, %v973_v1  ;;  %v1067_v24 = vmul.f32 %v1066_v2, %v1789_v40 }
 0x210   :  { %v1086_v16 = vmul.f32 %v1567_v9, %v1866_v36  ;;  %v1057_v4 = vsel %vm1056_vm13, %v1759_v18, %v1055_v6  ;;  %v1079_v20 = vmul.f32 %v1078_v3, %v1805_v52  ;;  %v983_v21 = vmul.f32 %v982_v12, %v1813_v56 }
 0x211   :  { %v993_v22 = vsub.f32 1.5, %v992_v11  ;;  %v1119_v0 = vperm.slane %v964_v13, %v1742_v5  ;;  %vm986_vm8 = vcmp.eq.f32.partialorder %v1813_v56, 0.0  ;;  %v987_v15 = vand.u32 2147483648, %v1813_v56 }
 0x212   :  { %v1087_v23 = vmul.f32 %v1567_v9, %v1086_v16  ;;  %v1120_v26 = vperm.slane %v976_v14, %v1742_v5  ;;  %v985_v27 = vsel %vm984_vm7, %v1813_v56, %v983_v21  ;;  %vm1143_vm10 = vcmask 1047559  }
 0x213   :  { %v994_v28 = vmul.f32 %v1565_v50, %v993_v22  ;;  %v1060_v29 = vsel %vm1058_vm15, %v1059_v58, %v1057_v4  ;;  %v1069_v31 = vsel %vm1068_vm0, %v1789_v40, %v1067_v24  ;;  %v988_v32 = vsel %vm986_vm8, %v987_v15, %v985_v27 }
 0x214   :  { %v1088_v41 = vmul.f32 0.5, %v1087_v23  ;;  %v1081_v17 = vsel %vm1080_vm5, %v1805_v52, %v1079_v20  ;;  %v1121_v30 = vperm.slane %v988_v32, %v1742_v5  ;;  %vm996_vm11 = vcmp.eq.f32.partialorder %v1847_v19, inf }
 0x215   :  { %v995_v35 = vmul.f32 %v994_v28, %v1847_v19  ;;  %v1138_v56 = vsel %vm1137_vm14, %v1119_v0, %v1136_v38  ;;  %vm998_vm12 = vcmp.eq.f32.partialorder %v1847_v19, 0.0  ;;  %v999_v18 = vand.u32 2147483648, %v1847_v19 }
 0x216   :  { %v1089_v39 = vsub.f32 1.5, %v1088_v41  ;;  %v1140_v43 = vsel %vm1139_vm1, %v1120_v26, %v1138_v56  ;;  %v1127_v44 = vperm.slane %v1060_v29, %v1742_v5  ;;  %v1072_v47 = vsel %vm1070_vm3, %v1071_v10, %v1069_v31 }
 0x217   :  { %v997_v48 = vsel %vm996_vm11, %v1847_v19, %v995_v35  ;;  %v1084_v49 = vsel %vm1082_vm6, %v1083_v37, %v1081_v17  ;;  %v1142_v51 = vsel %vm1141_vm4, %v1121_v30, %v1140_v43  ;;  %v1146_v33 = vsel %vm1133_vm2, %v1125_v45, %v1869_v42 }
 0x218   :  { %v1000_v53 = vsel %vm998_vm12, %v999_v18, %v997_v48  ;;  %v1090_v55 = vmul.f32 %v1567_v9, %v1089_v39  ;;  %vm1154_vm13 = vcmask 64512   ;;  %v1147_v40 = vsel %vm1135_vm9, %v1126_v63, %v1146_v33 }
 0x219   :  { %v1122_v34 = vperm.slane %v1000_v53, %v1742_v5  ;;  %v1128_v52 = vperm.slane %v1072_v47, %v1742_v5  ;;  %vm1092_vm15 = vcmp.eq.f32.partialorder %v1866_v36, inf  ;;  %v1148_v50 = vsel %vm1137_vm14, %v1127_v44, %v1147_v40 }
 0x21a   :  { %v1091_v19 = vmul.f32 %v1090_v55, %v1866_v36  ;;  %v1129_v25 = vperm.slane %v1084_v49, %v1742_v5  ;;  %v1095_v45 = vand.u32 2147483648, %v1866_v36  ;;  %vm1094_vm2 = vcmp.eq.f32.partialorder %v1866_v36, 0.0 }
 0x21b   :  { %v1144_v42 = vsel %vm1143_vm10, %v1122_v34, %v1142_v51  ;;  %v1149_v58 = vsel %vm1139_vm1, %v1128_v52, %v1148_v50 }
 0x21c   :  { %1155 = vst.msk [vmem:[%s1986_s4] sm:$0xff] %vm1154_vm13, %v1144_v42  ;;  %v1093_v46 = vsel %vm1092_vm15, %v1866_v36, %v1091_v19  ;;  %v1150_v63 = vsel %vm1141_vm4, %v1129_v25, %v1149_v58 }
 0x21d   :  { %v1096_v57 = vsel %vm1094_vm2, %v1095_v45, %v1093_v46 }
 0x21e   :  { %v1130_v59 = vperm.slane %v1096_v57, %v1742_v5 }
 0x220   :  { %v1151_v54 = vsel %vm1143_vm10, %v1130_v59, %v1150_v63 }
 0x221   :  { %1156 = vst.msk [vmem:[%s1986_s4 + $0x8] sm:$0xff] %vm1154_vm13, %v1151_v54 }
 0x222   :  { %1161 = vsyncpa [#allocation3], 1 }
 0x223   :  { %1162 = vsyncpa [#allocation5], 1 }

</bundles_post_ra>
